<compile_context>
chip_gen: v5e
topology: v5e:2x2
jax: 0.10.0
libtpu: 0.0.40
codegen_flags: <defaults>
</compile_context>

<pallas_src>
import jax
import jax.numpy as jnp
from jax.experimental import pallas as pl
from jax.experimental.pallas import tpu as pltpu

_LANES = 128
_MIB = 1024 * 1024


def _vmem_capacity_bytes():
    """Physical VMEM of the local TPU; conservative 64 MiB (v7x) fallback."""
    try:
        return int(pltpu.get_tpu_info().vmem_capacity_bytes)
    except Exception:
        return 64 * _MIB


def _per_tile_row_bytes(out_itemsize):
    # x block (f32, double-buffered) + two output blocks (double-buffered)
    # + ~6 (TR,128) f32 temporaries the compiler may materialize
    # (lx, x_tm, x_bc, e_t, e_u, e_t*diff).
    return (2 * _LANES * 4) + 2 * (2 * _LANES * out_itemsize) + 6 * _LANES * 4


def _pick_tile_rows(rows_per_c, hard_max_rows, target_rows):
    """Tile rows: a divisor of rows_per_c that is a multiple of 8 (the (8,128)
    block constraint) and <= min(target_rows, hard_max_rows), or the full dim."""
    target = max(8, min(target_rows, hard_max_rows))
    if rows_per_c <= target:
        return rows_per_c
    for d in range((target // 8) * 8, 7, -8):
        if rows_per_c % d == 0:
            return d
    # TODO(synk): no multiple-of-8 divisor <= target (does not happen for the
    # stride-32 YOLOX resolutions); pad/mask a tail tile instead of falling
    # back to the whole per-channel slab.
    return rows_per_c


def yolox_preproc_kernel(scal_ref, scale_ref, shift_ref, x_ref,
                         xtm_ref, xbc_ref, stats_ref):
    c = pl.program_id(1)

    inv_gamma = scal_ref[0]
    lam = scal_ref[1]
    inv_lam = scal_ref[2]
    m_t = scal_ref[3]          # static upper bound of x_tm (softmax shift); M_u = 0
    sc = scale_ref[c]          # per-channel folded BN scale (SMEM scalar)
    sh = shift_ref[c]          # per-channel folded BN shift (SMEM scalar)

    x = x_ref[...]             # (TR, 128) float32

    # torch: `if max(x) > 1: x[x > 1] = 114/255`
    # (if no element is > 1 the masked assignment is a no-op, so the global
    #  max-gate is equivalent to the unconditional elementwise replacement)
    x = jnp.where(x > 1.0, jnp.float32(114.0 / 255.0), x)

    # One log per element; both fractional powers derived via exp (EUP dedup).
    # After the replacement x <= 1, so lx <= 0 already (no extra clamp needed).
    lx = jnp.log(jnp.maximum(x, 1e-6))

    # --- SimpleGammaEnhancedBN: clip(x,1e-6,1)^(1/gamma), then eval-mode BN
    #     folded into a per-channel scale/shift.
    xg = jnp.exp(inv_gamma * lx)
    x_tm = xg * sc + sh

    # --- LearnableBoxCoxTransform: (x^lambda - 1) / lambda
    # TODO(synk): lambda -> 0 degenerate Box-Cox (log branch) is not handled.
    x_bc = (jnp.exp(lam * lx) - 1.0) * inv_lam

    xtm_ref[...] = (x_tm * 255.0).astype(xtm_ref.dtype)
    # x_bc only feeds the KL; it is emitted (bf16) for checkability and could
    # be elided entirely if the caller only consumes the loss.
    xbc_ref[...] = x_bc.astype(xbc_ref.dtype)

    # --- per-tile softmax partial sums with *static* shifts (m_t, 0) --------
    # Removes the loop-carried online-max, so every grid axis is independent.
    e_t = jnp.exp(x_tm - m_t)
    e_u = jnp.exp(x_bc)                    # x_bc <= 0, so shift 0 is a valid bound
    stats_ref[0:1, :] = jnp.sum(e_t, axis=0, keepdims=True)
    stats_ref[1:2, :] = jnp.sum(e_t * (x_tm - x_bc), axis=0, keepdims=True)
    stats_ref[2:3, :] = jnp.sum(e_u, axis=0, keepdims=True)


def yolox_forward(x_nchw, params, norm_factor=1.0, *,
                  out_dtype=jnp.bfloat16, tile_target_rows=None):
    """x_nchw: (B, C, H, W) float32. Returns (x_tm*255, x_bc, kl_loss).

    out_dtype defaults to bfloat16 (streaming kernel is HBM-bound on v5e/v6e);
    pass jnp.float32 for bit-accurate reference checking.
    """
    B, C, H, W = x_nchw.shape
    HW = H * W
    # Lane-dense layout requires H*W % 128 == 0 (true for YOLOX resolutions).
    assert HW % _LANES == 0, "H*W must be a multiple of 128"
    Rc = HW // _LANES          # rows per channel in the (Rc, 128) layout

    out_itemsize = jnp.dtype(out_dtype).itemsize
    per_row = _per_tile_row_bytes(out_itemsize)
    cap = _vmem_capacity_bytes()
    budget = min(cap - 8 * _MIB, int(cap * 0.75))
    hard_max = max(8, (budget // per_row) // 8 * 8)
    if tile_target_rows is None:
        tile_target_rows = 8192 if cap >= 100 * _MIB else 4096
    TR = _pick_tile_rows(Rc, hard_max, tile_target_rows)
    NT = Rc // TR
    vmem_limit = int(min(cap - 4 * _MIB, TR * per_row + 16 * _MIB))

    x4 = x_nchw.reshape(B, C, Rc, _LANES).astype(jnp.float32)

    # SimpleGammaEnhancedBN parameterization: gamma in gamma_range via sigmoid
    gmin, gmax = params["gamma_range"]
    gamma = gmin + jax.nn.sigmoid(params["gamma_raw"]) * (gmax - gmin)
    lam = params["boxcox_lambda"]

    # fold eval-mode BatchNorm (running stats) into per-channel scale / shift
    eps = 1e-5
    scale_c = (params["bn_weight"] /
               jnp.sqrt(params["bn_running_var"] + eps)).astype(jnp.float32)
    shift_c = (params["bn_bias"] -
               params["bn_running_mean"] * scale_c).astype(jnp.float32)

    # Static upper bound of x_tm: xg in (0, 1], so per channel
    # max(x_tm) <= max(scale_c, 0) + shift_c (handles negative BN scale).
    # Any bound >= the true max keeps the shifted softmax sums exact & stable.
    m_t = jnp.max(jnp.maximum(scale_c, 0.0) + shift_c).astype(jnp.float32)

    scalars = jnp.stack([1.0 / gamma, lam, 1.0 / lam, m_t]).astype(jnp.float32)

    x_tm255, x_bc, stats = pl.pallas_call(
        yolox_preproc_kernel,
        out_shape=(
            jax.ShapeDtypeStruct((B, C, Rc, _LANES), out_dtype),
            jax.ShapeDtypeStruct((B, C, Rc, _LANES), out_dtype),
            jax.ShapeDtypeStruct((B, C, NT, 3, _LANES), jnp.float32),
        ),
        grid_spec=pltpu.PrefetchScalarGridSpec(
            num_scalar_prefetch=0,
            grid=(B, C, NT),
            in_specs=[
                pl.BlockSpec(memory_space=pltpu.MemorySpace.SMEM),   # scalars (4,)
                pl.BlockSpec(memory_space=pltpu.MemorySpace.SMEM),   # bn scale (C,)
                pl.BlockSpec(memory_space=pltpu.MemorySpace.SMEM),   # bn shift (C,)
                pl.BlockSpec((None, None, TR, _LANES),
                             lambda b, c, t: (b, c, t, 0)),          # x
            ],
            out_specs=(
                pl.BlockSpec((None, None, TR, _LANES),
                             lambda b, c, t: (b, c, t, 0)),
                pl.BlockSpec((None, None, TR, _LANES),
                             lambda b, c, t: (b, c, t, 0)),
                pl.BlockSpec((None, None, None, 3, _LANES),
                             lambda b, c, t: (b, c, t, 0, 0)),
            ),
        ),
        compiler_params=pltpu.CompilerParams(
            dimension_semantics=("parallel", "parallel", "parallel"),
            vmem_limit_bytes=vmem_limit,
        ),
    )(scalars, scale_c, shift_c, x4)

    # --- finalize per-batch KL(softmax(x_tm) || softmax(x_bc)) in plain JAX --
    # KL_b = sum_i p_i*(t_i - u_i) - lse(t) + lse(u), with p from x_tm.
    s_t = jnp.sum(stats[:, :, :, 0, :], axis=(1, 2, 3))   # (B,)
    w_t = jnp.sum(stats[:, :, :, 1, :], axis=(1, 2, 3))
    s_u = jnp.sum(stats[:, :, :, 2, :], axis=(1, 2, 3))
    lse_t = m_t + jnp.log(s_t)
    lse_u = jnp.log(s_u)
    kl_per_b = w_t / s_t - lse_t + lse_u
    # TODO(synk): KLDivLossModule is not defined in the provided source; this
    # assumes KL(softmax(x_tm) || softmax(x_bc)) summed per image with batch-
    # mean reduction; adjust if the module uses reduction='mean' over elements.
    kl = (jnp.sum(kl_per_b) / jnp.float32(B)) * jnp.float32(norm_factor)

    # TODO(synk): fpn_outs = backbone(x_tm*255); outputs = head(fpn_outs) — the
    # YOLOPAFPN / YOLOXHead definitions are not part of the provided module.
    return x_tm255.reshape(B, C, H, W), x_bc.reshape(B, C, H, W), kl


def yolox_forward_ref(x_nchw, params, norm_factor=1.0):
    """Pure-JAX reference for correctness checking (same math as kernel)."""
    B, C, H, W = x_nchw.shape
    x = x_nchw.reshape(B, C, H * W).astype(jnp.float32)
    x = jnp.where(x > 1.0, 114.0 / 255.0, x)
    gmin, gmax = params["gamma_range"]
    gamma = gmin + jax.nn.sigmoid(params["gamma_raw"]) * (gmax - gmin)
    xg = jnp.clip(x, 1e-6, 1.0) ** (1.0 / gamma)
    eps = 1e-5
    scale_c = params["bn_weight"] / jnp.sqrt(params["bn_running_var"] + eps)
    shift_c = params["bn_bias"] - params["bn_running_mean"] * scale_c
    x_tm = xg * scale_c.reshape(1, C, 1) + shift_c.reshape(1, C, 1)
    lam = params["boxcox_lambda"]
    x_bc = (jnp.clip(x, 1e-6, None) ** lam - 1.0) / lam
    log_p = jax.nn.log_softmax(x_tm.reshape(B, -1), axis=-1)
    log_q = jax.nn.log_softmax(x_bc.reshape(B, -1), axis=-1)
    kl = jnp.sum(jnp.exp(log_p) * (log_p - log_q)) / B * norm_factor
    return (x_tm * 255.0).reshape(B, C, H, W), x_bc.reshape(B, C, H, W), kl


def _check(x, params, norm_factor, rtol, atol, **kwargs):
    x_tm255, x_bc, kl = yolox_forward(x, params, norm_factor, **kwargs)
    jax.block_until_ready((x_tm255, x_bc, kl))
    r_tm, r_bc, r_kl = yolox_forward_ref(x, params, norm_factor)
    assert jnp.allclose(x_tm255.astype(jnp.float32), r_tm,
                        rtol=rtol, atol=atol), "x_tm mismatch"
    assert jnp.allclose(x_bc.astype(jnp.float32), r_bc,
                        rtol=rtol, atol=atol), "x_bc mismatch"
    assert jnp.allclose(kl, r_kl, rtol=2e-3, atol=1e-4), "kl mismatch"


if __name__ == "__main__":
    key = jax.random.PRNGKey(0)
    B, C, H, W = 2, 4, 16, 16

    # input image in roughly [0, 1.2] so the `x > 1 -> 114/255` branch is exercised
    x = jax.random.uniform(key, (B, C, H, W), dtype=jnp.float32,
                           minval=0.0, maxval=1.2)

    # deterministic parameter init (shapes implied by the module's __init__)
    params = {
        "gamma_range": (1.0, 4.0),
        "gamma_raw": jnp.float32(0.0),           # -> gamma = 2.5
        "boxcox_lambda": jnp.float32(0.5),       # LearnableBoxCoxTransform lambda
        "bn_weight": jnp.ones((C,), jnp.float32),
        "bn_bias": jnp.zeros((C,), jnp.float32),
        "bn_running_mean": jnp.zeros((C,), jnp.float32),
        "bn_running_var": jnp.ones((C,), jnp.float32),
    }

    # 1) f32 outputs: tight check of the kernel math (single row tile / channel)
    _check(x, params, norm_factor=1.0, out_dtype=jnp.float32,
           rtol=1e-4, atol=1e-3)

    # 2) default bf16 outputs (perf config): bf16-level tolerances
    _check(x, params, norm_factor=1.0, out_dtype=jnp.bfloat16,
           rtol=1e-2, atol=5e-2)

    # 3) larger spatial size with a forced small row tile so the multi-tile
    #    (NT > 1 per channel) partial-stats path and the wrapper-side KL
    #    combine are exercised: rows_per_channel = 32, TR = 8 -> 4 tiles.
    x_big = jax.random.uniform(jax.random.PRNGKey(0), (2, 4, 64, 64),
                               dtype=jnp.float32, minval=0.0, maxval=1.2)
    _check(x_big, params, norm_factor=0.7, out_dtype=jnp.bfloat16,
           tile_target_rows=8, rtol=1e-2, atol=5e-2)

    print("KERNEL_OK")
</pallas_src>

<mosaic_0001>
module attributes {stable_mosaic.version = 11 : i64} {
  func.func @yolox_preproc_kernel(%arg0: i32, %arg1: i32, %arg2: i32, %arg3: memref<4xf32, #tpu.memory_space<smem>>, %arg4: memref<4xf32, #tpu.memory_space<smem>>, %arg5: memref<4xf32, #tpu.memory_space<smem>>, %arg6: memref<1x1x2x128xf32, #tpu.memory_space<vmem>>, %arg7: memref<1x1x2x128xf32, #tpu.memory_space<vmem>>, %arg8: memref<1x1x2x128xf32, #tpu.memory_space<vmem>>, %arg9: memref<1x1x1x3x128xf32, #tpu.memory_space<vmem>>) attributes {dimension_semantics = [#tpu.dimension_semantics<parallel>, #tpu.dimension_semantics<parallel>, #tpu.dimension_semantics<parallel>], iteration_bounds = array<i64: 2, 4, 1>, scalar_prefetch = 0 : i64, scratch_operands = 0 : i64, tpu.core_type = #tpu.core_type<tc>, window_params = [{transform_indices = @transform_0, window_bounds = array<i64: 4>}, {transform_indices = @transform_1, window_bounds = array<i64: 4>}, {transform_indices = @transform_2, window_bounds = array<i64: 4>}, {transform_indices = @transform_3, window_bounds = array<i64: 1, 1, 2, 128>}, {transform_indices = @transform_4, window_bounds = array<i64: 1, 1, 2, 128>}, {transform_indices = @transform_5, window_bounds = array<i64: 1, 1, 2, 128>}, {transform_indices = @transform_6, window_bounds = array<i64: 1, 1, 1, 3, 128>}]} {
    %c0 = arith.constant 0 : index
    %0 = memref.load %arg3[%c0] : memref<4xf32, #tpu.memory_space<smem>>
    %c1 = arith.constant 1 : index
    %1 = memref.load %arg3[%c1] : memref<4xf32, #tpu.memory_space<smem>>
    %c2 = arith.constant 2 : index
    %2 = memref.load %arg3[%c2] : memref<4xf32, #tpu.memory_space<smem>>
    %c3 = arith.constant 3 : index
    %3 = memref.load %arg3[%c3] : memref<4xf32, #tpu.memory_space<smem>>
    %4 = arith.index_cast %arg1 : i32 to index
    %5 = memref.load %arg4[%4] : memref<4xf32, #tpu.memory_space<smem>>
    %6 = arith.index_cast %arg1 : i32 to index
    %7 = memref.load %arg5[%6] : memref<4xf32, #tpu.memory_space<smem>>
    %c0_0 = arith.constant 0 : index
    %c0_1 = arith.constant 0 : index
    %c0_2 = arith.constant 0 : index
    %c0_3 = arith.constant 0 : index
    %8 = vector.load %arg6[%c0_0, %c0_1, %c0_2, %c0_3] : memref<1x1x2x128xf32, #tpu.memory_space<vmem>>, vector<1x1x2x128xf32>
    %9 = vector.shape_cast %8 : vector<1x1x2x128xf32> to vector<2x128xf32>
    %cst = arith.constant 1.000000e+00 : f32
    %10 = vector.broadcast %cst : f32 to vector<2x128xf32>
    %11 = arith.cmpf ogt, %9, %10 : vector<2x128xf32>
    %cst_4 = arith.constant 0.447058827 : f32
    %12 = vector.broadcast %cst_4 : f32 to vector<2x128xf32>
    %13 = arith.select %11, %12, %9 : vector<2x128xi1>, vector<2x128xf32>
    %cst_5 = arith.constant 9.99999997E-7 : f32
    %14 = vector.broadcast %cst_5 : f32 to vector<2x128xf32>
    %15 = arith.maximumf %13, %14 : vector<2x128xf32>
    %16 = math.log %15 : vector<2x128xf32>
    %17 = vector.broadcast %0 : f32 to vector<2x128xf32>
    %18 = arith.mulf %17, %16 : vector<2x128xf32>
    %19 = math.exp %18 : vector<2x128xf32>
    %20 = vector.broadcast %5 : f32 to vector<2x128xf32>
    %21 = arith.mulf %19, %20 : vector<2x128xf32>
    %22 = vector.broadcast %7 : f32 to vector<2x128xf32>
    %23 = arith.addf %21, %22 : vector<2x128xf32>
    %24 = vector.broadcast %1 : f32 to vector<2x128xf32>
    %25 = arith.mulf %24, %16 : vector<2x128xf32>
    %26 = math.exp %25 : vector<2x128xf32>
    %cst_6 = arith.constant 1.000000e+00 : f32
    %27 = vector.broadcast %cst_6 : f32 to vector<2x128xf32>
    %28 = arith.subf %26, %27 : vector<2x128xf32>
    %29 = vector.broadcast %2 : f32 to vector<2x128xf32>
    %30 = arith.mulf %28, %29 : vector<2x128xf32>
    %cst_7 = arith.constant 2.550000e+02 : f32
    %31 = vector.broadcast %cst_7 : f32 to vector<2x128xf32>
    %32 = arith.mulf %23, %31 : vector<2x128xf32>
    %c0_8 = arith.constant 0 : index
    %c0_9 = arith.constant 0 : index
    %c0_10 = arith.constant 0 : index
    %c0_11 = arith.constant 0 : index
    %33 = vector.load %arg7[%c0_8, %c0_9, %c0_10, %c0_11] : memref<1x1x2x128xf32, #tpu.memory_space<vmem>>, vector<1x1x2x128xf32>
    %34 = vector.shape_cast %33 : vector<1x1x2x128xf32> to vector<2x128xf32>
    %35 = vector.shape_cast %32 : vector<2x128xf32> to vector<1x1x2x128xf32>
    tpu.vector_store %arg7[%c0_8, %c0_9, %c0_10, %c0_11], %35 {strides = array<i32>} : memref<1x1x2x128xf32, #tpu.memory_space<vmem>>, vector<1x1x2x128xf32>,
    %c0_12 = arith.constant 0 : index
    %c0_13 = arith.constant 0 : index
    %c0_14 = arith.constant 0 : index
    %c0_15 = arith.constant 0 : index
    %36 = vector.load %arg8[%c0_12, %c0_13, %c0_14, %c0_15] : memref<1x1x2x128xf32, #tpu.memory_space<vmem>>, vector<1x1x2x128xf32>
    %37 = vector.shape_cast %36 : vector<1x1x2x128xf32> to vector<2x128xf32>
    %38 = vector.shape_cast %30 : vector<2x128xf32> to vector<1x1x2x128xf32>
    tpu.vector_store %arg8[%c0_12, %c0_13, %c0_14, %c0_15], %38 {strides = array<i32>} : memref<1x1x2x128xf32, #tpu.memory_space<vmem>>, vector<1x1x2x128xf32>,
    %39 = vector.broadcast %3 : f32 to vector<2x128xf32>
    %40 = arith.subf %23, %39 : vector<2x128xf32>
    %41 = math.exp %40 : vector<2x128xf32>
    %42 = math.exp %30 : vector<2x128xf32>
    %cst_16 = arith.constant dense<0.000000e+00> : vector<128xf32>
    %43 = vector.multi_reduction <add>, %41, %cst_16 [0] : vector<2x128xf32> to vector<128xf32>
    %44 = vector.shape_cast %43 : vector<128xf32> to vector<1x128xf32>
    %c0_17 = arith.constant 0 : index
    %c0_18 = arith.constant 0 : index
    %c0_19 = arith.constant 0 : index
    %c0_20 = arith.constant 0 : index
    %c0_21 = arith.constant 0 : index
    %45 = vector.load %arg9[%c0_17, %c0_18, %c0_19, %c0_20, %c0_21] : memref<1x1x1x3x128xf32, #tpu.memory_space<vmem>>, vector<1x1x1x1x128xf32>
    %46 = vector.shape_cast %45 : vector<1x1x1x1x128xf32> to vector<1x128xf32>
    %47 = vector.shape_cast %44 : vector<1x128xf32> to vector<1x1x1x1x128xf32>
    tpu.vector_store %arg9[%c0_17, %c0_18, %c0_19, %c0_20, %c0_21], %47 {strides = array<i32>} : memref<1x1x1x3x128xf32, #tpu.memory_space<vmem>>, vector<1x1x1x1x128xf32>,
    %48 = arith.subf %23, %30 : vector<2x128xf32>
    %49 = arith.mulf %41, %48 : vector<2x128xf32>
    %cst_22 = arith.constant dense<0.000000e+00> : vector<128xf32>
    %50 = vector.multi_reduction <add>, %49, %cst_22 [0] : vector<2x128xf32> to vector<128xf32>
    %51 = vector.shape_cast %50 : vector<128xf32> to vector<1x128xf32>
    %c0_23 = arith.constant 0 : index
    %c0_24 = arith.constant 0 : index
    %c0_25 = arith.constant 0 : index
    %c1_26 = arith.constant 1 : index
    %c0_27 = arith.constant 0 : index
    %52 = vector.load %arg9[%c0_23, %c0_24, %c0_25, %c1_26, %c0_27] : memref<1x1x1x3x128xf32, #tpu.memory_space<vmem>>, vector<1x1x1x1x128xf32>
    %53 = vector.shape_cast %52 : vector<1x1x1x1x128xf32> to vector<1x128xf32>
    %54 = vector.shape_cast %51 : vector<1x128xf32> to vector<1x1x1x1x128xf32>
    tpu.vector_store %arg9[%c0_23, %c0_24, %c0_25, %c1_26, %c0_27], %54 {strides = array<i32>} : memref<1x1x1x3x128xf32, #tpu.memory_space<vmem>>, vector<1x1x1x1x128xf32>,
    %cst_28 = arith.constant dense<0.000000e+00> : vector<128xf32>
    %55 = vector.multi_reduction <add>, %42, %cst_28 [0] : vector<2x128xf32> to vector<128xf32>
    %56 = vector.shape_cast %55 : vector<128xf32> to vector<1x128xf32>
    %c0_29 = arith.constant 0 : index
    %c0_30 = arith.constant 0 : index
    %c0_31 = arith.constant 0 : index
    %c2_32 = arith.constant 2 : index
    %c0_33 = arith.constant 0 : index
    %57 = vector.load %arg9[%c0_29, %c0_30, %c0_31, %c2_32, %c0_33] : memref<1x1x1x3x128xf32, #tpu.memory_space<vmem>>, vector<1x1x1x1x128xf32>
    %58 = vector.shape_cast %57 : vector<1x1x1x1x128xf32> to vector<1x128xf32>
    %59 = vector.shape_cast %56 : vector<1x128xf32> to vector<1x1x1x1x128xf32>
    tpu.vector_store %arg9[%c0_29, %c0_30, %c0_31, %c2_32, %c0_33], %59 {strides = array<i32>} : memref<1x1x1x3x128xf32, #tpu.memory_space<vmem>>, vector<1x1x1x1x128xf32>,
    return
  }
  func.func @transform_0(%arg0: i32, %arg1: i32, %arg2: i32) -> i32 {
    %c0_i32 = arith.constant 0 : i32
    %c0_i32_0 = arith.constant 0 : i32
    return %c0_i32 : i32
  }
  func.func @transform_1(%arg0: i32, %arg1: i32, %arg2: i32) -> i32 {
    %c0_i32 = arith.constant 0 : i32
    %c0_i32_0 = arith.constant 0 : i32
    return %c0_i32 : i32
  }
  func.func @transform_2(%arg0: i32, %arg1: i32, %arg2: i32) -> i32 {
    %c0_i32 = arith.constant 0 : i32
    %c0_i32_0 = arith.constant 0 : i32
    return %c0_i32 : i32
  }
  func.func @transform_3(%arg0: i32, %arg1: i32, %arg2: i32) -> (i32, i32, i32, i32) {
    %c0_i32 = arith.constant 0 : i32
    %c0_i32_0 = arith.constant 0 : i32
    return %arg0, %arg1, %arg2, %c0_i32 : i32, i32, i32, i32
  }
  func.func @transform_4(%arg0: i32, %arg1: i32, %arg2: i32) -> (i32, i32, i32, i32) {
    %c0_i32 = arith.constant 0 : i32
    %c0_i32_0 = arith.constant 0 : i32
    return %arg0, %arg1, %arg2, %c0_i32 : i32, i32, i32, i32
  }
  func.func @transform_5(%arg0: i32, %arg1: i32, %arg2: i32) -> (i32, i32, i32, i32) {
    %c0_i32 = arith.constant 0 : i32
    %c0_i32_0 = arith.constant 0 : i32
    return %arg0, %arg1, %arg2, %c0_i32 : i32, i32, i32, i32
  }
  func.func @transform_6(%arg0: i32, %arg1: i32, %arg2: i32) -> (i32, i32, i32, i32, i32) {
    %c0_i32 = arith.constant 0 : i32
    %c0_i32_0 = arith.constant 0 : i32
    %c0_i32_1 = arith.constant 0 : i32
    return %arg0, %arg1, %arg2, %c0_i32, %c0_i32_0 : i32, i32, i32, i32, i32
  }
}

</mosaic_0001>

<bundles_post_ra>
// kernel: tpu_custom_call.1
= control target key start
LH: loop header
LB: loop body
LE: loop exit
PB: predicated region body
PF: predicated region fallthrough
CT: control target
= control target key end

     0   :  { %s1344_s0 = inlined_call_operand.hbm [shape: f32[4], index: 0, kind: input, shape index: {}]   ;;  %s1345_s1 = inlined_call_operand.hbm [shape: f32[4], index: 1, kind: input, shape index: {}]   ;;  %s1346_s2 = inlined_call_operand.vmem [shape: f32[4], index: 2, kind: input, shape index: {}]   ;;  %s1347_s3 = inlined_call_operand.hbm [shape: f32[2,4,2,128], index: 3, kind: input, shape index: {}]   ;;  %s1348_s4 = inlined_call_operand.hbm [shape: f32[2,4,2,128], index: 4, kind: output, shape index: {0}]   ;;  %s1349_s5 = inlined_call_operand.hbm [shape: f32[2,4,2,128], index: 5, kind: output, shape index: {1}]   ;;  %s1350_s6 = inlined_call_operand.vmem [shape: f32[2,4,1,3,128], index: 6, kind: output, shape index: {2}]  }
   0x1   :  { %1357 = sst [smem:[#allocation25_spill]] %s1344_s0 }
   0x2   :  { %1358 = sst [smem:[#allocation26_spill]] %s1345_s1 }
   0x3   :  { %1359 = sst [smem:[#allocation27_spill]] %s1346_s2 }
   0x4   :  { %1360 = sst [smem:[#allocation28_spill]] %s1350_s6 }
   0x5   :  { %12 = vsyncpa [#allocation5], 0 }
   0x6   :  { %13 = vsyncpa [#allocation8], 0 }
   0x7   :  { %14 = vsyncpa [#allocation6], 0 }
   0x8   :  { %15 = vsyncpa [#allocation3], 0 }
   0x9   :  { %17 = vsyncpa [#allocation3 + $0x1], 0 }
   0xa   :  { %18 = vsyncpa [#allocation4], 0 }
   0xb   :  { %20 = vsyncpa [#allocation4 + $0x1], 0 }
   0xc   :  { %21 = vsyncpa [#allocation13], 0 }
   0xd   :  { %23 = vsyncpa [#allocation13 + $0x1], 0  ;;  %s1115_s21 = smov 0   ;;  %s1117_s22 = smov 0  }
   0xe   :  { %s1119_s23 = smov 0   ;;  %s1121_s24 = smov 0  }
   0xf   :  { %s1123_s25 = smov 0   ;;  %s1125_s26 = smov 0  }
  0x10   :  { %s1127_s27 = smov 0   ;;  %s1129_s28 = smov 0  }
  0x11 LB: > { %1361 = sst [smem:[#allocation20_spill]] %s1047_s21  ;;  %s703_s29 = sadd.s32 4294967295, %s1075_s28   ;;  %s1075_s28 = sphi %s1129_s28, %s29_s28   ;;  %s1071_s27 = sphi %s1127_s27, %s1388_s27   ;;  %s1067_s26 = sphi %s1125_s26, %s1387_s26   ;;  %s1063_s25 = sphi %s1123_s25, %s1386_s25   ;;  %s1059_s24 = sphi %s1121_s24, %s1385_s24   ;;  %s1055_s23 = sphi %s1119_s23, %s1384_s23   ;;  %s1051_s22 = sphi %s1117_s22, %s1383_s22   ;;  %s1047_s21 = sphi %s1115_s21, %s1382_s21  }
  0x12   : > { %s704_s30 = sadd.s32 4294967294, %s1075_s28   ;;  %p135_p0 = scmp.ne.s32.totalorder %s1051_s22, %s1047_s21 }
  0x13   : > { %p1159_p1 = scmp.eq.s32.totalorder %s703_s29, 0  ;;  %p1163_p2 = scmp.eq.s32.totalorder %s703_s29, 7 }
  0x14   : > { %p169_p3 = scmp.eq.s32.totalorder %s704_s30, 7  ;;  %p705_p5 = scmp.ge.s32.totalorder %s1075_s28, 1 }
  0x15   : > { %p1169_p4 = por %p1159_p1, %p135_p0  ;;  %p236_p7 = scmp.lt.s32.totalorder %s1075_s28, 9 }
  0x16   : > { %p1174_p6 = por %p169_p3, %p135_p0  ;;  %s1367_s0 = sld [smem:[#allocation25_spill]] }
  0x17   : > { %p1182_p8 = pnand %p705_p5, %p236_p7  ;;  %s1369_s1 = sld [smem:[#allocation26_spill]] }
  0x18   : > { %s1365_s10 = scalar_select %p1174_p6, 1, 0 }
  0x19   : > { %p752_p9 = pneg %p1182_p8  ;;  %s1370_s2 = sld [smem:[#allocation27_spill]] }
  0x1a   : > { %1366 = sst [smem:[#allocation21_spill]] %s1365_s10  ;;  %s1077_s29 = smov [#allocation2]  }
  0x1b   : > { %p753_p10 = pnand %p752_p9, %p1159_p1  ;;  %s1078_s30 = smov [#allocation7]  }
  0x1c   : > { %s248_s13 = sshll.u32 %s1367_s0, 4  ;;  %s1079_s11 = smov [#allocation9]   ;;  %s249_s13 = int_to_ptr.hbm [resolvable:$true] %s248_s13 }
  0x1d   : > { %s258_s17 = sshll.u32 %s1369_s1, 4  ;;  %s44_s12 = sadd.s32 1, %s1067_s26  ;;  %s259_s17 = int_to_ptr.hbm [resolvable:$true] %s258_s17 }
  0x1e   : > { %755 = dma.hbm_to_smem (!%p753_p10), %s249_s13, 16, %s1077_s29, [#allocation5]  }
  0x1f   : > { %s268_s20 = sshll.u32 %s1370_s2, 4  ;;  %p46_p11 = scmp.ge.s32.totalorder %s44_s12, 4  ;;  %s269_s20 = int_to_ptr.vmem [resolvable:$true] %s268_s20 }
  0x20   : > { %758 = dma.hbm_to_smem (!%p753_p10), %s259_s17, 16, %s1078_s30, [#allocation8]  }
  0x21   : > { %761 = dma.vmem_to_smem (!%p753_p10), %s269_s20, 16, %s1079_s11, [#allocation6]  }
  0x22   : > { %s48_s15 = sadd.s32 1, %s1071_s27  ;;  %s122_s16 = sadd.s32 1, %s1055_s23 }
  0x23   : > { %p129_p12 = scmp.ne.s32.totalorder %s1055_s23, %s1051_s22  ;;  %s1390_s12 = smov (%p46_p11, %s44_s12), 0 }
  0x24   : > { %1371 = sst [smem:[#allocation22_spill]] %s1390_s12  ;;  %s1392_s15 = smov (!%p46_p11, %s48_s15), %s1071_s27 }
  0x25   : > { %s116_s18 = ssub.s32 %s1067_s26, %s1390_s12  ;;  %p130_p13 = scmp.eq.s32.totalorder %s1075_s28, 0 }
  0x26   : > { %p50_p0 = scmp.ge.s32.totalorder %s1392_s15, 2  ;;  %p1209_p3 = por %p1163_p2, %p129_p12 }
  0x27   : > { %p1213_p5 = por %p130_p13, %p129_p12  ;;  %p776_p7 = scmp.lt.s32.totalorder %s1075_s28, 8 }
  0x28   : > { %s1372_s13 = scalar_select %p1209_p3, 1, 0 }
  0x29   : > { %s1394_s15 = smov (%p50_p0, %s1392_s15), 0  ;;  %s279_s19 = sand.u32 1, %s1055_s23  }
  0x2a   : > { %1373 = sst [smem:[#allocation23_spill]] %s1372_s13  ;;  %s711_s20 = sshll.u32 %s1071_s27, 2 }
  0x2b   : > { %1375 = sst [smem:[#allocation24_spill]] %s1394_s15  ;;  %s115_s29 = ssub.s32 %s1071_s27, %s1394_s15 }
  0x2c   : > { %s117_s30 = sor.u32 %s116_s18, %s115_s29  ;;  %s710_s11 = sshll.u32 %s279_s19, 1 }
  0x2d   : > { %p120_p9 = scmp.eq.s32.totalorder %s117_s30, 0  ;;  %s288_s8 = sadd.s32 %s1067_s26, %s711_s20 }
  0x2e   : > { %s283_s0 = scalar_lea.vmem [#allocation10], %s710_s11  ;;  %s712_s12 = sshll.u32 %s288_s8, 1 }
  0x2f   : > { %s294_s1 = sshll.u32 %s283_s0, 4  ;;  %s290_s6 = scalar_lea.hbm %s1347_s3, %s712_s12  ;;  %s295_s1 = int_to_ptr.vmem [resolvable:$true] %s294_s1 }
  0x30   : > { %s1226_s2 = scalar_select %p120_p9, %s1055_s23, %s122_s16  }
  0x31   : > { %p763_p2 = pnand %p776_p7, %p1213_p5  ;;  %s292_s13 = sshll.u32 %s290_s6, 4  ;;  %s293_s13 = int_to_ptr.hbm [resolvable:$true] %s292_s13 }
  0x32   : > { %s280_s15 = scalar_lea.sflag [#allocation3], %s279_s19  ;;  %303 = sbr.rel (%p1182_p8) target bundleno = 134 (0x86), region = 36 }
  0x33   : > { %765 = dma.hbm_to_vmem [thread:$0]  (!%p763_p2), %s293_s13, 32, %s295_s1, %s280_s15  }
  0x37   : > { %1022 = dma.done.wait (%p1159_p1), [#allocation5], 16  }
  0x38   : > { %1024 = vsyncadd (%p1159_p1), [#allocation5], 4294967280 }
  0x39   : > { %1026 = dma.done.wait (%p1159_p1), [#allocation8], 16  }
  0x3a   : > { %1028 = vsyncadd (%p1159_p1), [#allocation8], 4294967280 }
  0x3b   : > { %1030 = dma.done.wait (%p1159_p1), [#allocation6], 16  }
  0x3c   : > { %1032 = vsyncadd (%p1159_p1), [#allocation6], 4294967280  ;;  %s1250_s0 = sand.u32 1, %s1051_s22  }
  0x3d   : > { %s1253_s1 = sshll.u32 %s1250_s0, 1  ;;  %s321_s6 = scalar_lea.sflag [#allocation3], %s1250_s0 }
  0x3e   : > { %s324_s21 = scalar_lea.vmem [#allocation10], %s1253_s1 }
  0x3f   : > { %1034 = dma.done.wait (%p1169_p4), %s321_s6, 32  }
  0x40   : > { %1036 = vsyncadd (%p1169_p4), %s321_s6, 4294967264 }
  0x41   : > { %330 = sfence }
  0x42   : > { %v388_v0 = vld [vmem:[%s324_s21] sm:$0x3]  ;;  %s382_s7 = sld [smem:[#allocation2]]  ;;  %s728_s14 = sshll.u32 %s1063_s25, 2 }
  0x43   : > { %vm389_vm0 = vcmp.gt.f32.partialorder %v388_v0, 1.0  ;;  %s722_s10 = sld [smem:[#allocation2 + $0x1]]  ;;  %s473_s15 = sadd.s32 %s1059_s24, %s728_s14 }
  0x44   : > { %v390_v1 = vsel %vm389_vm0, 0.44705883, %v388_v0  ;;  %s386_s12 = sld [smem:[#allocation7 + %s1059_s24]]  ;;  %s729_s13 = sshll.u32 %s473_s15, 1 }
  0x45   : > { %v391_v2 = vmax.f32 %v390_v1, 1e-06  ;;  %s387_s9 = sld [smem:[#allocation9 + %s1059_s24]]  ;;  %s492_s20 = scalar_lea.hbm %s1349_s5, %s729_s13 }
  0x46   : > { %s723_s16 = sld [smem:[#allocation2 + $0x2]]  ;;  %s475_s11 = scalar_lea.hbm %s1348_s4, %s729_s13 }
  0x47   : > { %848 = vlog2.f32 %v391_v2  ;;  %s724_s18 = sld [smem:[#allocation2 + $0x3]]  ;;  %s350_s8 = scalar_lea.vmem [#allocation11], %s1253_s1 }
  0x48   : > { %v394_v4 = vstv %s382_s7  ;;  %s1272_s6 = sshll.u32 %s350_s8, 4  ;;  %s357_s21 = scalar_lea.vmem [#allocation12], %s1253_s1  ;;  %s478_s6 = int_to_ptr.vmem [resolvable:$true] %s1272_s6 }
  0x49   : > { %v402_v5 = vstv %s722_s10  ;;  %s1275_s7 = sshll.u32 %s357_s21, 4  ;;  %s496_s10 = sshll.u32 %s492_s20, 4  ;;  %s495_s7 = int_to_ptr.vmem [resolvable:$true] %s1275_s7  ;;  %s497_s10 = int_to_ptr.hbm [resolvable:$true] %s496_s10 }
  0x4a   : > { %v398_v11 = vstv %s386_s12  ;;  %s479_s14 = sshll.u32 %s475_s11, 4  ;;  %p371_p1 = scmp.lt.s32.totalorder %s1063_s25, 1  ;;  %s1279_s14 = int_to_ptr.hbm [resolvable:$true] %s479_s14 }
  0x4b   : > { %v400_v13 = vstv %s387_s9  ;;  %s451_s1 = scalar_lea.sflag [#allocation13], %s1250_s0  ;;  %s947_s9 = sshra.s32 %s497_s10, 4  ;;  %s948_s9 = int_to_ptr.hbm [resolvable:$true] %s947_s9 }
  0x4c   : > { %v407_v16 = vstv %s723_s16  ;;  %s949_s15 = scalar_lea.hbm %s948_s9, 2  ;;  %s953_s13 = scalar_lea.hbm %s1349_s5, 16 }
  0x4d   : > { %v849_v3 = vpop.eup %848  ;;  %v412_v17 = vstv %s724_s18  ;;  %p950_p4 = scmp.ne.s32.totalorder %s948_s9, %s949_s15  ;;  %p954_p11 = scmp.lt.s32.totalorder %s948_s9, %s1349_s5 }
  0x4e   : > { %v393_v6 = vmul.f32 0.6931472, %v849_v3  ;;  %p955_p12 = scmp.lt.s32.totalorder %s953_s13, %s949_s15 }
  0x4f   : > { %p951_p8 = pnand %p950_p4, %p1209_p3 }
  0x50   : > { %v395_v7 = vmul.f32 %v394_v4, %v393_v6  ;;  %v403_v8 = vmul.f32 %v402_v5, %v393_v6  ;;  %p956_p13 = por %p955_p12, %p954_p11 }
  0x51   : > { %p952_p10 = pneg %p951_p8 }
  0x52   : > { %v396_v9 = vmul.f32 1.442695, %v395_v7  ;;  %v404_v10 = vmul.f32 1.442695, %v403_v8 }
  0x53   : > { %p957_p0 = pnand %p956_p13, %p952_p10 }
  0x54   : > { %850 = vpow2.f32 %v396_v9 }
  0x55   : > { %852 = vpow2.f32 %v404_v10 }
  0x5a   : > { %v851_v12 = vpop.eup %850 }
  0x5b   : > { %v853_v14 = vpop.eup %852  ;;  %v399_v15 = vmul.f32 %v851_v12, %v398_v11 }
  0x5c   : > { %v725_v18 = vadd.f32 -1.0, %v853_v14 }
  0x5d   : > { %v401_v19 = vadd.f32 %v400_v13, %v399_v15 }
  0x5e   : > { %v408_v20 = vmul.f32 %v725_v18, %v407_v16 }
  0x5f   : > { %v409_v21 = vmul.f32 255.0, %v401_v19  ;;  %v413_v22 = vsub.f32 %v401_v19, %v412_v17 }
  0x60   : > { %411 = vst [vmem:[%s357_s21] sm:$0x3] %v408_v20  ;;  %v416_v23 = vmul.f32 1.442695, %v408_v20 }
  0x61   : > { %410 = vst [vmem:[%s350_s8] sm:$0x3] %v409_v21  ;;  %v414_v24 = vmul.f32 1.442695, %v413_v22 }
  0x62   : > { %960 = shalt.err (!%p957_p0)
}
  0x63   : > { %749 = dma.vmem_to_hbm [thread:$0]  (%p1209_p3), %s495_s7, 32, %s497_s10, %s451_s1   ;;  %854 = vpow2.f32 %v416_v23 }
  0x64   : > { %s446_s20 = scalar_lea.sflag [#allocation4], %s1250_s0  ;;  %s975_s29 = sshra.s32 %s1279_s14, 4  ;;  %s976_s29 = int_to_ptr.hbm [resolvable:$true] %s975_s29 }
  0x65   : > { %s977_s30 = scalar_lea.hbm %s976_s29, 2  ;;  %s981_s21 = scalar_lea.hbm %s1348_s4, 16 }
  0x66   : > { %p978_p5 = scmp.ne.s32.totalorder %s976_s29, %s977_s30  ;;  %p982_p2 = scmp.lt.s32.totalorder %s976_s29, %s1348_s4 }
  0x67   : > { %p983_p4 = scmp.lt.s32.totalorder %s981_s21, %s977_s30 }
  0x68   : > { %p979_p7 = pnand %p978_p5, %p1209_p3 }
  0x69   : > { %p984_p8 = por %p983_p4, %p982_p2 }
  0x6a   : > { %p980_p9 = pneg %p979_p7 }
  0x6c   : > { %p985_p10 = pnand %p984_p8, %p980_p9 }
  0x6e   : > { %988 = shalt.err (!%p985_p10)
}
  0x6f   : > { %748 = dma.vmem_to_hbm [thread:$0]  (%p1209_p3), %s478_s6, 32, %s1279_s14, %s446_s20   ;;  %856 = vpow2.f32 %v414_v24  ;;  %v427_v25 = vsub.f32 %v401_v19, %v408_v20  ;;  %vm418_vm1 = vcmask 1041408   ;;  %v855_v26 = vpop.eup %854 }
  0x70   : > { %p373_p11 = scmp.lt.s32.totalorder %s1059_s24, 3  ;;  %s1396_s25 = smov (!%p371_p1, %s1063_s25), 1  ;;  %v437_v28 = vsel %vm418_vm1, %v855_v26, 0.0 }
  0x71   : > { %s720_s0 = sshll.u32 %s1396_s25, 2  ;;  %v438_v31 = vrot.slane %v437_v28, 4  ;;  %s1377_s25 = sld [smem:[#allocation28_spill]] }
  0x72   : > { %s1398_s24 = smov (!%p373_p11, %s1059_s24), 3 }
  0x73   : > { %v439_v34 = vadd.f32 %v438_v31, %v437_v28  ;;  %s379_s7 = sadd.s32 %s720_s0, %s1398_s24 }
  0x74   : > { %s721_s6 = sshll.u32 %s379_s7, 2 }
  0x75   : > { %v857_v27 = vpop.eup %856  ;;  %v440_v37 = vrot.slane %v439_v34, 2 }
  0x76   : > { %v419_v29 = vsel %vm418_vm1, %v857_v27, 0.0  ;;  %v428_v30 = vmul.f32 %v857_v27, %v427_v25 }
  0x77   : > { %v420_v32 = vrot.slane %v419_v29, 4  ;;  %v441_v40 = vadd.f32 %v440_v37, %v439_v34  ;;  %s381_s12 = scalar_lea.vmem %s1377_s25, %s721_s6 }
  0x78   : > { %v429_v33 = vsel %vm418_vm1, %v428_v30, 0.0 }
  0x79   : > { %v421_v35 = vadd.f32 %v420_v32, %v419_v29  ;;  %v430_v36 = vrot.slane %v429_v33, 4  ;;  %v442_v43 = vrot.slane %v441_v40, 1 }
  0x7b   : > { %v422_v38 = vrot.slane %v421_v35, 2  ;;  %v431_v39 = vadd.f32 %v430_v36, %v429_v33  ;;  %v443_v46 = vadd.f32 %v442_v43, %v441_v40 }
  0x7d   : > { %v423_v41 = vadd.f32 %v422_v38, %v421_v35  ;;  %v432_v42 = vrot.slane %v431_v39, 2  ;;  %444 = vst [vmem:[%s381_s12 + $0x2] sm:$0x1] %v443_v46 }
  0x7f   : > { %v424_v44 = vrot.slane %v423_v41, 1  ;;  %v433_v45 = vadd.f32 %v432_v42, %v431_v39 }
  0x81   : > { %v425_v47 = vadd.f32 %v424_v44, %v423_v41  ;;  %v434_v48 = vrot.slane %v433_v45, 1 }
  0x83   : > { %426 = vst [vmem:[%s381_s12] sm:$0x1] %v425_v47  ;;  %v435_v49 = vadd.f32 %v434_v48, %v433_v45 }
  0x85   : > { %436 = vst [vmem:[%s381_s12 + $0x1] sm:$0x1] %v435_v49 }
  0x86 PF: > { %s1378_s24 = sld [smem:[#allocation20_spill]]  ;;  %p780_p3 = scmp.ge.s32.totalorder %s1075_s28, 2 }
  0x88   : > { %p767_p1 = pnand %p780_p3, %p1174_p6 }
  0x8a   : > { %p768_p12 = pneg %p767_p1 }
  0x8c   : > { %s511_s16 = sand.u32 1, %s1378_s24  }
  0x8d   : > { %s512_s18 = scalar_lea.sflag [#allocation4], %s511_s16 }
  0x8e   : > { %1038 = dma.done.wait (%p768_p12), %s512_s18, 32  }
  0x8f   : > { %1040 = vsyncadd (%p768_p12), %s512_s18, 4294967264  ;;  %s522_s13 = scalar_lea.sflag [#allocation13], %s511_s16 }
  0x90   : > { %1042 = dma.done.wait (%p768_p12), %s522_s13, 32  }
  0x91   : > { %1044 = vsyncadd (%p768_p12), %s522_s13, 4294967264  ;;  %s29_s28 = sadd.s32 1, %s1075_s28   ;;  %s1380_s17 = sld [smem:[#allocation22_spill]] }
  0x92   : > { %p26_p13 = scmp.ge.s32.totalorder %s29_s28, 10   ;;  %s1381_s19 = sld [smem:[#allocation24_spill]] }
  0x93   : > { %s1382_s21 = smov %s1051_s22  ;;  %s1383_s22 = smov %s1055_s23 }
  0x94   : > { %s1384_s23 = smov %s1226_s2  ;;  %s1385_s24 = smov %s1067_s26 }
  0x95   : > { %s1386_s25 = smov %s1071_s27  ;;  %28 = sbr.rel (!%p26_p13) target bundleno = 17 (0x11), region = 124 }
  0x97   : > { %s1387_s26 = smov %s1380_s17 }
  0x98   : > { %s1388_s27 = smov %s1381_s19 }
  0x9a   :  { %542 = vsyncpa [#allocation3], 1 }
  0x9b   :  { %544 = vsyncpa [#allocation3 + $0x1], 1 }
  0x9c   :  { %545 = vsyncpa [#allocation4], 1 }
  0x9d   :  { %547 = vsyncpa [#allocation4 + $0x1], 1 }
  0x9e   :  { %548 = vsyncpa [#allocation13], 1 }
  0x9f   :  { %550 = vsyncpa [#allocation13 + $0x1], 1 }
  0xa0   :  { %551 = vsyncpa [#allocation5], 1 }
  0xa1   :  { %553 = vsyncpa [#allocation5 + $0x1], 1 }
  0xa2   :  { %554 = vsyncpa [#allocation8], 1 }
  0xa3   :  { %555 = vsyncpa [#allocation6], 1 }
  0xa4   :  { %557 = vsyncpa [#allocation6 + $0x1], 1 }

</bundles_post_ra>
